<compile_context>
chip_gen: v6e
topology: v6e:2x2x1
jax: 0.10.0
libtpu: 0.0.40
codegen_flags: <defaults>
</compile_context>

<pallas_src>
import jax
import jax.numpy as jnp
from jax.experimental import pallas as pl
from jax.experimental.pallas import tpu as pltpu


def _cdiv(a, b):
    return -(-a // b)


def _round_up(x, m):
    return ((x + m - 1) // m) * m


def _batch_tile(B, block_b):
    """Fewer, bigger, balanced batch tiles (multiple of 16 for bf16 packing)."""
    # >= 2 tiles once B >= 512 so the "parallel" grid axis has something to
    # shard across v7x's two TensorCores; single step otherwise.
    num_tiles = max(_cdiv(B, block_b), 2 if B >= 512 else 1)
    tb = _round_up(_cdiv(B, num_tiles), 16)   # bf16 packs 16 rows per vreg
    tb = min(tb, _round_up(B, 8))             # tiny batches: keep the block close to B
    return tb


def dqn_kernel(s_ref, a_ref, w1s_ref, w1a_ref, b1_ref, w2_ref, b2_ref,
               w3_ref, b3_ref, o_ref):
    # In-kernel bf16 cast of the f32 activation tiles (saves the separate
    # wrapper-side astype pass over HBM; the VPU cast hides under slack).
    s_bf = s_ref[...].astype(jnp.bfloat16)
    a_bf = a_ref[...].astype(jnp.bfloat16)

    # ----- layer 1 (fused concat): x @ w1 == s @ w1[:ni] + a @ w1[ni:] -----
    h1 = (jnp.dot(s_bf, w1s_ref[...], preferred_element_type=jnp.float32)
          + jnp.dot(a_bf, w1a_ref[...], preferred_element_type=jnp.float32)
          + b1_ref[...])                       # f32 accumulate, f32 bias
    h1 = jnp.maximum(h1, 0.0)                  # ReLU in f32 (v5e-safe VPU)

    # ----- layer 2 -----
    h2 = (jnp.dot(h1.astype(jnp.bfloat16), w2_ref[...],
                  preferred_element_type=jnp.float32) + b2_ref[...])
    h2 = jnp.maximum(h2, 0.0)                  # stays f32

    # ----- layer 3 (out_features == 1): VPU multiply + XLU lane reduce -----
    o_ref[...] = jnp.sum(h2 * w3_ref[...], axis=-1, keepdims=True) + b3_ref[...]


def dqn_forward(state, action, params, *, block_b=1024):
    """Pallas-backed DQN forward. params from init_dqn_params (bf16 matmul weights)."""
    w1s, w1a, b1, w2, b2, w3t, b3 = params
    B, ni = state.shape
    na = action.shape[1]
    H = w2.shape[0]

    TB = _batch_tile(B, block_b)
    grid = (_cdiv(B, TB),)   # partial last block handled by Pallas masking

    # Activations: tiled over the batch (f32 straight from HBM, cast in-kernel).
    # Weights/biases: constant block index -> fetched once, VMEM-resident.
    in_specs = [
        pl.BlockSpec((TB, ni), lambda i: (i, 0)),   # state tile (f32)
        pl.BlockSpec((TB, na), lambda i: (i, 0)),   # action tile (f32)
        pl.BlockSpec((ni, H), lambda i: (0, 0)),    # w1_s (bf16)
        pl.BlockSpec((na, H), lambda i: (0, 0)),    # w1_a (bf16)
        pl.BlockSpec((1, H), lambda i: (0, 0)),     # b1 (f32)
        pl.BlockSpec((H, H), lambda i: (0, 0)),     # w2 (bf16)
        pl.BlockSpec((1, H), lambda i: (0, 0)),     # b2 (f32)
        pl.BlockSpec((1, H), lambda i: (0, 0)),     # w3 transposed row (f32)
        pl.BlockSpec((1, 1), lambda i: (0, 0)),     # b3 (f32)
    ]
    out_spec = pl.BlockSpec((TB, 1), lambda i: (i, 0))

    out = pl.pallas_call(
        dqn_kernel,
        grid=grid,
        in_specs=in_specs,
        out_specs=out_spec,
        out_shape=jax.ShapeDtypeStruct((B, 1), jnp.float32),
        compiler_params=pltpu.CompilerParams(
            # Batch tiles are independent -> shard across v7x's 2 TCs.
            # VMEM stays ~2.5 MiB even at TB=1024, H=256, so no
            # vmem_limit_bytes override is needed on any generation.
            dimension_semantics=("parallel",)),
    )(state, action, w1s, w1a, b1, w2, b2, w3t, b3)

    return out   # exact (B, 1): OOB rows of partial blocks are never written


def init_dqn_params(key, num_inputs, num_actions, hidden_size=256, init_w=0.003):
    """Init mirroring the PyTorch module, packed into the kernel layout.

    linear1/linear2: uniform(-1/sqrt(fan_in), 1/sqrt(fan_in)); linear3: uniform(-init_w, init_w).
    Returns (w1_s[bf16], w1_a[bf16], b1[f32], w2[bf16], b2[f32], w3_t[f32 1xH], b3[f32 1x1]).
    Matmul weights are stored bf16 (MXU operands); this is a documented,
    systematic quantization vs. the f32 PyTorch module (covered by test tol).
    """
    in_dim = num_inputs + num_actions
    ks = jax.random.split(key, 6)

    def unif(k, shape, bound):
        return jax.random.uniform(k, shape, jnp.float32, -bound, bound)

    bound1 = 1.0 / float(in_dim) ** 0.5
    bound2 = 1.0 / float(hidden_size) ** 0.5

    w1 = unif(ks[0], (in_dim, hidden_size), bound1)
    b1 = unif(ks[1], (1, hidden_size), bound1)
    w2 = unif(ks[2], (hidden_size, hidden_size), bound2)
    b2 = unif(ks[3], (1, hidden_size), bound2)
    w3 = unif(ks[4], (hidden_size, 1), init_w)
    b3 = unif(ks[5], (1, 1), init_w)

    return (
        w1[:num_inputs].astype(jnp.bfloat16),   # w1_s
        w1[num_inputs:].astype(jnp.bfloat16),   # w1_a
        b1,
        w2.astype(jnp.bfloat16),
        b2,
        w3.T,                                    # [1, hidden], f32 (used on VPU)
        b3,
    )


def dqn_reference(state, action, params):
    """Pure-JAX f32 reference using the same (bf16-quantized) weights."""
    w1s, w1a, b1, w2, b2, w3t, b3 = params
    x = (state @ w1s.astype(jnp.float32)
         + action @ w1a.astype(jnp.float32) + b1)
    x = jnp.maximum(x, 0.0)
    x = jnp.maximum(x @ w2.astype(jnp.float32) + b2, 0.0)
    return x @ w3t.T.astype(jnp.float32) + b3


if __name__ == "__main__":
    key = jax.random.PRNGKey(0)
    k_state, k_action, k_params, k_state2, k_action2 = jax.random.split(key, 5)

    # Small demo shapes; hidden=256 matches the module default (and fills the
    # v6e/v7x MXU in K and N for the dominant layer-2 matmul).
    B = 8
    num_inputs = 16
    num_actions = 4
    hidden_size = 256

    params = init_dqn_params(k_params, num_inputs, num_actions, hidden_size)

    state = jax.random.normal(k_state, (B, num_inputs), jnp.float32)
    action = jax.random.normal(k_action, (B, num_actions), jnp.float32)

    out = dqn_forward(state, action, params)
    out = jax.block_until_ready(out)
    ref = dqn_reference(state, action, params)
    assert out.shape == (B, 1), out.shape
    assert jnp.allclose(out, ref, atol=1e-2, rtol=1e-2), "mismatch vs reference (B=8)"

    # Ragged batch: exercises the partial-block path (block 304 vs array 300,
    # single grid step, no wrapper-side padding or slicing).
    B2 = 300
    state2 = jax.random.normal(k_state2, (B2, num_inputs), jnp.float32)
    action2 = jax.random.normal(k_action2, (B2, num_actions), jnp.float32)
    out2 = jax.block_until_ready(dqn_forward(state2, action2, params))
    ref2 = dqn_reference(state2, action2, params)
    assert out2.shape == (B2, 1), out2.shape
    assert jnp.allclose(out2, ref2, atol=1e-2, rtol=1e-2), "mismatch vs reference (B=300)"

    print("KERNEL_OK")
</pallas_src>

<mosaic_0001>
module attributes {stable_mosaic.version = 11 : i64} {
  func.func @dqn_kernel(%arg0: i32, %arg1: memref<8x16xf32, #tpu.memory_space<vmem>>, %arg2: memref<8x4xf32, #tpu.memory_space<vmem>>, %arg3: memref<16x256xbf16, #tpu.memory_space<vmem>>, %arg4: memref<4x256xbf16, #tpu.memory_space<vmem>>, %arg5: memref<1x256xf32, #tpu.memory_space<vmem>>, %arg6: memref<256x256xbf16, #tpu.memory_space<vmem>>, %arg7: memref<1x256xf32, #tpu.memory_space<vmem>>, %arg8: memref<1x256xf32, #tpu.memory_space<vmem>>, %arg9: memref<1x1xf32, #tpu.memory_space<vmem>>, %arg10: memref<8x1xf32, #tpu.memory_space<vmem>>) attributes {dimension_semantics = [#tpu.dimension_semantics<parallel>], iteration_bounds = array<i64: 1>, scalar_prefetch = 0 : i64, scratch_operands = 0 : i64, tpu.core_type = #tpu.core_type<tc>, window_params = [{transform_indices = @transform_0, window_bounds = array<i64: 8, 16>}, {transform_indices = @transform_1, window_bounds = array<i64: 8, 4>}, {pipeline_mode = #tpu.pipeline_mode<synchronous>, transform_indices = @transform_2, window_bounds = array<i64: 16, 256>}, {pipeline_mode = #tpu.pipeline_mode<synchronous>, transform_indices = @transform_3, window_bounds = array<i64: 4, 256>}, {pipeline_mode = #tpu.pipeline_mode<synchronous>, transform_indices = @transform_4, window_bounds = array<i64: 1, 256>}, {pipeline_mode = #tpu.pipeline_mode<synchronous>, transform_indices = @transform_5, window_bounds = array<i64: 256, 256>}, {pipeline_mode = #tpu.pipeline_mode<synchronous>, transform_indices = @transform_6, window_bounds = array<i64: 1, 256>}, {pipeline_mode = #tpu.pipeline_mode<synchronous>, transform_indices = @transform_7, window_bounds = array<i64: 1, 256>}, {pipeline_mode = #tpu.pipeline_mode<synchronous>, transform_indices = @transform_8, window_bounds = array<i64: 1, 1>}, {transform_indices = @transform_9, window_bounds = array<i64: 8, 1>}]} {
    %c0 = arith.constant 0 : index
    %c0_0 = arith.constant 0 : index
    %0 = vector.load %arg1[%c0, %c0_0] : memref<8x16xf32, #tpu.memory_space<vmem>>, vector<8x16xf32>
    %1 = arith.truncf %0 : vector<8x16xf32> to vector<8x16xbf16>
    %c0_1 = arith.constant 0 : index
    %c0_2 = arith.constant 0 : index
    %2 = vector.load %arg2[%c0_1, %c0_2] : memref<8x4xf32, #tpu.memory_space<vmem>>, vector<8x4xf32>
    %3 = arith.truncf %2 : vector<8x4xf32> to vector<8x4xbf16>
    %c0_3 = arith.constant 0 : index
    %c0_4 = arith.constant 0 : index
    %4 = vector.load %arg3[%c0_3, %c0_4] : memref<16x256xbf16, #tpu.memory_space<vmem>>, vector<16x256xbf16>
    %cst = arith.constant dense<0.000000e+00> : vector<8x256xf32>
    %5 = tpu.matmul %1, %4, %cst {dimension_numbers = #tpu.dot_dimension_numbers<[1], [0], [0], [1], [0, 0, 1, 1], [], []>} : vector<8x16xbf16>, vector<16x256xbf16>, vector<8x256xf32> -> vector<8x256xf32>
    %c0_5 = arith.constant 0 : index
    %c0_6 = arith.constant 0 : index
    %6 = vector.load %arg4[%c0_5, %c0_6] : memref<4x256xbf16, #tpu.memory_space<vmem>>, vector<4x256xbf16>
    %cst_7 = arith.constant dense<0.000000e+00> : vector<8x256xf32>
    %7 = tpu.matmul %3, %6, %cst_7 {dimension_numbers = #tpu.dot_dimension_numbers<[1], [0], [0], [1], [0, 0, 1, 1], [], []>} : vector<8x4xbf16>, vector<4x256xbf16>, vector<8x256xf32> -> vector<8x256xf32>
    %8 = arith.addf %5, %7 : vector<8x256xf32>
    %c0_8 = arith.constant 0 : index
    %c0_9 = arith.constant 0 : index
    %9 = vector.load %arg5[%c0_8, %c0_9] : memref<1x256xf32, #tpu.memory_space<vmem>>, vector<1x256xf32>
    %10 = vector.broadcast %9 : vector<1x256xf32> to vector<8x256xf32>
    %11 = arith.addf %8, %10 : vector<8x256xf32>
    %cst_10 = arith.constant 0.000000e+00 : f32
    %12 = vector.broadcast %cst_10 : f32 to vector<8x256xf32>
    %13 = arith.maximumf %11, %12 : vector<8x256xf32>
    %14 = arith.truncf %13 : vector<8x256xf32> to vector<8x256xbf16>
    %c0_11 = arith.constant 0 : index
    %c0_12 = arith.constant 0 : index
    %15 = vector.load %arg6[%c0_11, %c0_12] : memref<256x256xbf16, #tpu.memory_space<vmem>>, vector<256x256xbf16>
    %cst_13 = arith.constant dense<0.000000e+00> : vector<8x256xf32>
    %16 = tpu.matmul %14, %15, %cst_13 {dimension_numbers = #tpu.dot_dimension_numbers<[1], [0], [0], [1], [0, 0, 1, 1], [], []>} : vector<8x256xbf16>, vector<256x256xbf16>, vector<8x256xf32> -> vector<8x256xf32>
    %c0_14 = arith.constant 0 : index
    %c0_15 = arith.constant 0 : index
    %17 = vector.load %arg7[%c0_14, %c0_15] : memref<1x256xf32, #tpu.memory_space<vmem>>, vector<1x256xf32>
    %18 = vector.broadcast %17 : vector<1x256xf32> to vector<8x256xf32>
    %19 = arith.addf %16, %18 : vector<8x256xf32>
    %cst_16 = arith.constant 0.000000e+00 : f32
    %20 = vector.broadcast %cst_16 : f32 to vector<8x256xf32>
    %21 = arith.maximumf %19, %20 : vector<8x256xf32>
    %c0_17 = arith.constant 0 : index
    %c0_18 = arith.constant 0 : index
    %22 = vector.load %arg8[%c0_17, %c0_18] : memref<1x256xf32, #tpu.memory_space<vmem>>, vector<1x256xf32>
    %23 = vector.broadcast %22 : vector<1x256xf32> to vector<8x256xf32>
    %24 = arith.mulf %21, %23 : vector<8x256xf32>
    %cst_19 = arith.constant dense<0.000000e+00> : vector<8xf32>
    %25 = vector.multi_reduction <add>, %24, %cst_19 [1] : vector<8x256xf32> to vector<8xf32>
    %26 = vector.shape_cast %25 : vector<8xf32> to vector<8x1xf32>
    %c0_20 = arith.constant 0 : index
    %c0_21 = arith.constant 0 : index
    %27 = vector.load %arg9[%c0_20, %c0_21] : memref<1x1xf32, #tpu.memory_space<vmem>>, vector<1x1xf32>
    %28 = vector.broadcast %27 : vector<1x1xf32> to vector<8x1xf32>
    %29 = arith.addf %26, %28 : vector<8x1xf32>
    %c0_22 = arith.constant 0 : index
    %c0_23 = arith.constant 0 : index
    %30 = vector.load %arg10[%c0_22, %c0_23] : memref<8x1xf32, #tpu.memory_space<vmem>>, vector<8x1xf32>
    tpu.vector_store %arg10[%c0_22, %c0_23], %29 {strides = array<i32>} : memref<8x1xf32, #tpu.memory_space<vmem>>, vector<8x1xf32>,
    return
  }
  func.func @transform_0(%arg0: i32) -> (i32, i32) {
    %c0_i32 = arith.constant 0 : i32
    %c0_i32_0 = arith.constant 0 : i32
    return %arg0, %c0_i32 : i32, i32
  }
  func.func @transform_1(%arg0: i32) -> (i32, i32) {
    %c0_i32 = arith.constant 0 : i32
    %c0_i32_0 = arith.constant 0 : i32
    return %arg0, %c0_i32 : i32, i32
  }
  func.func @transform_2(%arg0: i32) -> (i32, i32) {
    %c0_i32 = arith.constant 0 : i32
    %c0_i32_0 = arith.constant 0 : i32
    %c0_i32_1 = arith.constant 0 : i32
    return %c0_i32, %c0_i32_0 : i32, i32
  }
  func.func @transform_3(%arg0: i32) -> (i32, i32) {
    %c0_i32 = arith.constant 0 : i32
    %c0_i32_0 = arith.constant 0 : i32
    %c0_i32_1 = arith.constant 0 : i32
    return %c0_i32, %c0_i32_0 : i32, i32
  }
  func.func @transform_4(%arg0: i32) -> (i32, i32) {
    %c0_i32 = arith.constant 0 : i32
    %c0_i32_0 = arith.constant 0 : i32
    %c0_i32_1 = arith.constant 0 : i32
    return %c0_i32, %c0_i32_0 : i32, i32
  }
  func.func @transform_5(%arg0: i32) -> (i32, i32) {
    %c0_i32 = arith.constant 0 : i32
    %c0_i32_0 = arith.constant 0 : i32
    %c0_i32_1 = arith.constant 0 : i32
    return %c0_i32, %c0_i32_0 : i32, i32
  }
  func.func @transform_6(%arg0: i32) -> (i32, i32) {
    %c0_i32 = arith.constant 0 : i32
    %c0_i32_0 = arith.constant 0 : i32
    %c0_i32_1 = arith.constant 0 : i32
    return %c0_i32, %c0_i32_0 : i32, i32
  }
  func.func @transform_7(%arg0: i32) -> (i32, i32) {
    %c0_i32 = arith.constant 0 : i32
    %c0_i32_0 = arith.constant 0 : i32
    %c0_i32_1 = arith.constant 0 : i32
    return %c0_i32, %c0_i32_0 : i32, i32
  }
  func.func @transform_8(%arg0: i32) -> (i32, i32) {
    %c0_i32 = arith.constant 0 : i32
    %c0_i32_0 = arith.constant 0 : i32
    %c0_i32_1 = arith.constant 0 : i32
    return %c0_i32, %c0_i32_0 : i32, i32
  }
  func.func @transform_9(%arg0: i32) -> (i32, i32) {
    %c0_i32 = arith.constant 0 : i32
    %c0_i32_0 = arith.constant 0 : i32
    return %arg0, %c0_i32 : i32, i32
  }
}

</mosaic_0001>

<bundles_post_ra>
// kernel: tpu_custom_call.1
= control target key start
LH: loop header
LB: loop body
LE: loop exit
PB: predicated region body
PF: predicated region fallthrough
CT: control target
= control target key end

     0   :  { %s742_s0 = inlined_call_operand.hbm [shape: f32[8,16], index: 0, kind: input, shape index: {}]   ;;  %s743_s1 = inlined_call_operand.vmem [shape: f32[8,4], index: 1, kind: input, shape index: {}]   ;;  %s744_s2 = inlined_call_operand.vmem [shape: bf16[16,256], index: 2, kind: input, shape index: {}]   ;;  %s745_s3 = inlined_call_operand.hbm [shape: bf16[4,256], index: 3, kind: input, shape index: {}]   ;;  %s746_s4 = inlined_call_operand.vmem [shape: f32[1,256], index: 4, kind: input, shape index: {}]   ;;  %s747_s5 = inlined_call_operand.hbm [shape: bf16[256,256], index: 5, kind: input, shape index: {}]   ;;  %s748_s6 = inlined_call_operand.vmem [shape: f32[1,256], index: 6, kind: input, shape index: {}]   ;;  %s749_s7 = inlined_call_operand.vmem [shape: f32[1,256], index: 7, kind: input, shape index: {}]   ;;  %s750_s8 = inlined_call_operand.<no memory space> [shape: f32[1,1], index: 8, kind: input, shape index: {}]   ;;  %s751_s9 = inlined_call_operand.vmem [shape: f32[8,1], index: 9, kind: output, shape index: {}]  }
   0x1   :  { %v14_v0 = vstv %s750_s8 }
   0x2   :  { %15 = vst [vmem:[#allocation2] sm:$0x1] %v14_v0 }
   0x3   :  { %16 = vsyncpa [#allocation4], 0 }
   0x4   :  { %17 = vsyncpa [#allocation6], 0  ;;  %s653_s11 = smov [#allocation5]   ;;  %s654_s13 = smov [#allocation3]  }
   0x5   :  { %s38_s12 = sshll.u32 %s653_s11, 4  ;;  %s24_s14 = sshll.u32 %s654_s13, 4  ;;  %s39_s12 = int_to_ptr.vmem [resolvable:$true] %s38_s12  ;;  %s25_s14 = int_to_ptr.vmem [resolvable:$true] %s24_s14 }
   0x6   :  { %s597_s15 = scalar_lea.vmem %s39_s12, 64  ;;  %p602_p1 = scmp.lt.s32.totalorder %s39_s12, %s39_s12 }
   0x7   :  { %p598_p0 = scmp.ne.s32.totalorder %s39_s12, %s597_s15  ;;  %p603_p2 = scmp.lt.s32.totalorder %s597_s15, %s597_s15 }
   0x9   :  { %p604_p3 = por %p603_p2, %p602_p1 }
   0xb   :  { %p605_p4 = pnand %p604_p3, %p598_p0 }
   0xd   :  { %608 = shalt.err (!%p605_p4)
}
   0xe   :  { %41 = dma.hbm_to_vmem [thread:$0]  %s745_s3, 64, %s39_s12, [#allocation6]  }
   0xf   :  { %s617_s8 = scalar_lea.vmem %s25_s14, 128  ;;  %p622_p6 = scmp.lt.s32.totalorder %s25_s14, %s25_s14 }
  0x10   :  { %p618_p5 = scmp.ne.s32.totalorder %s25_s14, %s617_s8  ;;  %p623_p7 = scmp.lt.s32.totalorder %s617_s8, %s617_s8 }
  0x12   :  { %p624_p8 = por %p623_p7, %p622_p6 }
  0x14   :  { %p625_p9 = pnand %p624_p8, %p618_p5 }
  0x16   :  { %628 = shalt.err (!%p625_p9)
}
  0x17   :  { %27 = dma.hbm_to_vmem [thread:$0]  %s742_s0, 128, %s25_s14, [#allocation4]  }
  0x18   :  { %s655_s20 = smov [#allocation7]  }
  0x19   :  { %s49_s21 = sshll.u32 %s655_s20, 4  ;;  %s50_s21 = int_to_ptr.vmem [resolvable:$true] %s49_s21 }
  0x1a   :  { %s637_s22 = scalar_lea.vmem %s50_s21, 4096  ;;  %p642_p11 = scmp.lt.s32.totalorder %s50_s21, %s50_s21 }
  0x1b   :  { %p638_p10 = scmp.ne.s32.totalorder %s50_s21, %s637_s22  ;;  %p643_p12 = scmp.lt.s32.totalorder %s637_s22, %s637_s22 }
  0x1d   :  { %p644_p13 = por %p643_p12, %p642_p11 }
  0x1f   :  { %p645_p0 = pnand %p644_p13, %p638_p10 }
  0x21   :  { %648 = shalt.err (!%p645_p0)
}
  0x22   :  { %s656_s3 = smov 128   ;;  %s657_s23 = smov 8  }
  0x23   :  { %55 = dma.hbm_to_vmem [thread:$0]  %s747_s5, 4096, %s50_s21, [#allocation6], %s656_s3, %s656_s3, %s657_s23  }
  0x24   :  { %649 = dma.done.wait [#allocation4], 128  }
  0x25   :  { %650 = vsyncadd [#allocation4], 4294967168 }
  0x26   :  { %651 = dma.done.wait [#allocation6], 4160  }
  0x27   :  { %652 = vsyncadd [#allocation6], 4294963136  ;;  %v658_v1 = vmov 0   ;;  %vm92_vm0 = vcmask 1041408   ;;  %v74_v3 = vld [vmem:[%s743_s1] sm:$0xff]  ;;  %vm88_vm1 = vcmask 31744   ;;  %v197_v43 = vlaneseq }
  0x28   :  { %131 = vmatprep.mubr.bf16.mxu1 %v658_v1  ;;  %v493_v2 = vld.sshfl [vmem:[#allocation5] sm:$0x33 pattern:$0x76325410]  ;;  %v75_v7 = vpack.c.bf16 %v74_v3, %v74_v3  ;;  %v543_v9 = vld [vmem:[#allocation7 + $0x70] ss:$8 sps:$4 sm:$0xff]  }
  0x29   :  { %v87_v4 = vcombine.high %v493_v2, %v493_v2  ;;  %v94_v5 = vsel %vm92_vm0, %v493_v2, 0  ;;  %v540_v6 = vld [vmem:[%s744_s2 + $0x4] ss:$8 sps:$4 sm:$0xff]   ;;  %v538_v10 = vld [vmem:[%s744_s2] ss:$8 sps:$4 sm:$0xff]   ;;  %vm150_vm2 = vcmask 130048  }
  0x2a   :  { %v541_v8 = vld [vmem:[#allocation7 + $0x74] ss:$8 sps:$4 sm:$0xff]   ;;  %v544_v11 = vld [vmem:[#allocation7 + $0x64] ss:$8 sps:$4 sm:$0xff]   ;;  %v546_v12 = vld [vmem:[#allocation7 + $0x60] ss:$8 sps:$4 sm:$0xff]  }
  0x2b   :  { %494 = vmatprep.subr.msk.bf16.mxu1 %vm92_vm0, %v87_v4  ;;  %417 = vmatprep.subr.bf16.mxu0 %v541_v8  ;;  %v547_v13 = vld [vmem:[#allocation7 + $0x54] ss:$8 sps:$4 sm:$0xff]   ;;  %v549_v15 = vld [vmem:[#allocation7 + $0x50] ss:$8 sps:$4 sm:$0xff]   ;;  %v550_v17 = vld [vmem:[#allocation7 + $0x44] ss:$8 sps:$4 sm:$0xff]  }
  0x2c   :  { %114 = vmatpush1.bf16.msra.mxu1 %v94_v5  ;;  %418 = vmatpush1.bf16.msra.mxu0 %v543_v9  ;;  %v72_v14 = vld [vmem:[#allocation3] sm:$0xff]  ;;  %v552_v18 = vld [vmem:[#allocation7 + $0x40] ss:$8 sps:$4 sm:$0xff]   ;;  %v556_v21 = vld [vmem:[#allocation7 + $0x24] ss:$8 sps:$4 sm:$0xff]   ;;  %v198_v44 = vshrl.u32 %v197_v43, 7 }
  0x2d   :  { %168 = vmatprep.subr.bf16.mxu1 %v540_v6  ;;  %419 = vmatprep.subr.bf16.mxu0 %v544_v11  ;;  %v73_v16 = vpack.c.bf16 %v72_v14, %v72_v14  ;;  %v553_v19 = vld [vmem:[#allocation7 + $0x34] ss:$8 sps:$4 sm:$0xff]   ;;  %v555_v20 = vld [vmem:[#allocation7 + $0x30] ss:$8 sps:$4 sm:$0xff]   ;;  %v558_v22 = vld [vmem:[#allocation7 + $0x20] ss:$8 sps:$4 sm:$0xff]  }
  0x2e   :  { %v559_v23 = vld [vmem:[#allocation7 + $0x14] ss:$8 sps:$4 sm:$0xff]   ;;  %v561_v24 = vld [vmem:[#allocation7 + $0x10] ss:$8 sps:$4 sm:$0xff]   ;;  %v562_v25 = vld [vmem:[#allocation7 + $0x4] ss:$8 sps:$4 sm:$0xff]  }
  0x2f   :  { %495 = vmatmul.mubr.msk.bf16.vlgmr.msra.gmra.mxu1 %vm88_vm1, %v75_v7  ;;  %v564_v26 = vld [vmem:[#allocation7] ss:$8 sps:$4 sm:$0xff]   ;;  %v565_v27 = vld [vmem:[#allocation7 + $0xf4] ss:$8 sps:$4 sm:$0xff]   ;;  %v567_v28 = vld [vmem:[#allocation7 + $0xf0] ss:$8 sps:$4 sm:$0xff]  }
  0x30   :  { %169 = vmatpush1.bf16.msra.mxu1 %v538_v10  ;;  %186 = vmatprep.mubr.bf16.mxu1 %v658_v1  ;;  %v568_v29 = vld [vmem:[#allocation7 + $0xe4] ss:$8 sps:$4 sm:$0xff]   ;;  %v570_v30 = vld [vmem:[#allocation7 + $0xe0] ss:$8 sps:$4 sm:$0xff]   ;;  %v571_v31 = vld [vmem:[#allocation7 + $0xd4] ss:$8 sps:$4 sm:$0xff]  }
  0x31   :  { %420 = vmatpush1.bf16.msra.mxu0 %v546_v12  ;;  %v573_v32 = vld [vmem:[#allocation7 + $0xd0] ss:$8 sps:$4 sm:$0xff]   ;;  %v574_v33 = vld [vmem:[#allocation7 + $0xc4] ss:$8 sps:$4 sm:$0xff]   ;;  %v576_v34 = vld [vmem:[#allocation7 + $0xc0] ss:$8 sps:$4 sm:$0xff]  }
  0x32   :  { %421 = vmatprep.subr.bf16.mxu0 %v547_v13  ;;  %v577_v35 = vld [vmem:[#allocation7 + $0xb4] ss:$8 sps:$4 sm:$0xff]   ;;  %v579_v36 = vld [vmem:[#allocation7 + $0xb0] ss:$8 sps:$4 sm:$0xff]   ;;  %v580_v37 = vld [vmem:[#allocation7 + $0xa4] ss:$8 sps:$4 sm:$0xff]  }
  0x33   :  { %v582_v38 = vld [vmem:[#allocation7 + $0xa0] ss:$8 sps:$4 sm:$0xff]   ;;  %v583_v39 = vld [vmem:[#allocation7 + $0x94] ss:$8 sps:$4 sm:$0xff]   ;;  %v585_v40 = vld [vmem:[#allocation7 + $0x90] ss:$8 sps:$4 sm:$0xff]  }
  0x34   :  { %v586_v41 = vld [vmem:[#allocation7 + $0x84] ss:$8 sps:$4 sm:$0xff]   ;;  %v588_v42 = vld [vmem:[#allocation7 + $0x80] ss:$8 sps:$4 sm:$0xff]   ;;  %v199_v47 = vsub.s32 0, %v198_v44  ;;  %v203_v50 = vsub.s32 1, %v198_v44 }
  0x35   :  { %422 = vmatpush1.bf16.msra.mxu0 %v549_v15  ;;  %v195_v49 = vld [vmem:[%s746_s4] sm:$0x3]  ;;  %vm485_vm3 = vcmask 7168  }
  0x36   :  { %423 = vmatprep.subr.bf16.mxu0 %v550_v17  ;;  %v200_v52 = vrot.slane %v195_v49, %v199_v47  ;;  %v204_v55 = vrot.slane %v195_v49, %v203_v50  ;;  %v245_v2 = vld [vmem:[%s748_s6] sm:$0x3] }
  0x37   :  { %498 = vmatmul.mubr.msk.bf16.vlgmr.msra.gmra.mxu1 %vm150_vm2, %v73_v16  ;;  %v250_v3 = vrot.slane %v245_v2, %v199_v47  ;;  %v254_v4 = vrot.slane %v245_v2, %v203_v50  ;;  %v460_v6 = vld [vmem:[%s749_s7] sm:$0x3] }
  0x38   :  { %v465_v11 = vrot.slane %v460_v6, %v199_v47  ;;  %v469_v12 = vrot.slane %v460_v6, %v203_v50 }
  0x39   :  { %424 = vmatpush1.bf16.msra.mxu0 %v552_v18 }
  0x3a   :  { %425 = vmatprep.subr.bf16.mxu0 %v553_v19  ;;  %v531_v19 = vld [vmem:[#allocation2] ss:$0 sm:$0xff] }
  0x3d   :  { %426 = vmatpush1.bf16.msra.mxu0 %v555_v20 }
  0x3e   :  { %427 = vmatprep.subr.bf16.mxu0 %v556_v21 }
  0x41   :  { %428 = vmatpush1.bf16.msra.mxu0 %v558_v22 }
  0x42   :  { %429 = vmatprep.subr.bf16.mxu0 %v559_v23 }
  0x45   :  { %430 = vmatpush1.bf16.msra.mxu0 %v561_v24 }
  0x46   :  { %431 = vmatprep.subr.bf16.mxu0 %v562_v25 }
  0x49   :  { %432 = vmatpush1.bf16.msra.mxu0 %v564_v26 }
  0x4a   :  { %433 = vmatprep.subr.bf16.mxu0 %v565_v27 }
  0x4d   :  { %434 = vmatpush2.bf16.msra.mxu0 %v567_v28 }
  0x4e   :  { %435 = vmatprep.subr.bf16.mxu0 %v568_v29 }
  0x51   :  { %436 = vmatpush2.bf16.msra.mxu0 %v570_v30 }
  0x52   :  { %437 = vmatprep.subr.bf16.mxu0 %v571_v31 }
  0x55   :  { %438 = vmatpush2.bf16.msra.mxu0 %v573_v32 }
  0x56   :  { %439 = vmatprep.subr.bf16.mxu0 %v574_v33 }
  0x59   :  { %440 = vmatpush2.bf16.msra.mxu0 %v576_v34 }
  0x5a   :  { %441 = vmatprep.subr.bf16.mxu0 %v577_v35 }
  0x5d   :  { %442 = vmatpush2.bf16.msra.mxu0 %v579_v36 }
  0x5e   :  { %443 = vmatprep.subr.bf16.mxu0 %v580_v37 }
  0x61   :  { %444 = vmatpush2.bf16.msra.mxu0 %v582_v38 }
  0x62   :  { %445 = vmatprep.subr.bf16.mxu0 %v583_v39 }
  0x65   :  { %446 = vmatpush2.bf16.msra.mxu0 %v585_v40 }
  0x66   :  { %447 = vmatprep.subr.bf16.mxu0 %v586_v41 }
  0x69   :  { %448 = vmatpush2.bf16.msra.mxu0 %v588_v42 }
  0xef   :  { %v133_v45 = vpop.f32.mrf.mxu1 }
  0xf1   :  { %v135_v46 = vpop.f32.mrf.mxu1 }
  0xf3   :  { %v137_v48 = vpop.f32.mrf.mxu1 }
  0xf5   :  { %v138_v51 = vpop.f32.mrf.mxu1 }
  0xf7   :  { %v188_v53 = vpop.f32.mrf.mxu1 }
  0xf8   :  { %v189_v54 = vadd.f32 %v188_v53, %v133_v45 }
  0xf9   :  { %v190_v56 = vpop.f32.mrf.mxu1 }
  0xfa   :  { %v207_v57 = vadd.f32 %v200_v52, %v189_v54  ;;  %v191_v58 = vadd.f32 %v190_v56, %v135_v46 }
  0xfb   :  { %v192_v59 = vpop.f32.mrf.mxu1 }
  0xfc   :  { %v208_v60 = vadd.f32 %v204_v55, %v191_v58  ;;  %v209_v61 = vmax.f32 %v207_v57, 0.0 }
  0xfd   :  { %v193_v62 = vpop.f32.mrf.mxu1 }
  0xfe   :  { %v210_v63 = vmax.f32 %v208_v60, 0.0  ;;  %v211_v1 = vpack.c.bf16 %v209_v61, %v209_v61 }
 0x100   :  { %v212_v0 = vpack.c.bf16 %v210_v63, %v210_v63 }
 0x102   :  { %449 = vmatprep.mubr.bf16.mxu0 %v212_v0 }
 0x103   :  { %450 = vmatmul.mubr.bf16.vlgmr.msra.gmra.mxu0 %v211_v1 }
 0x1c3   :  { %v451_v5 = vpop.f32.mrf.mxu0 }
 0x1c4   :  { %v452_v7 = vadd.f32 %v451_v5, %v250_v3 }
 0x1c5   :  { %v453_v8 = vpop.f32.mrf.mxu0 }
 0x1c6   :  { %v458_v9 = vmax.f32 %v452_v7, 0.0  ;;  %v454_v10 = vadd.f32 %v453_v8, %v254_v4 }
 0x1c7   :  { %v455_v13 = vpop.f32.mrf.mxu0 }
 0x1c8   :  { %v459_v14 = vmax.f32 %v454_v10, 0.0  ;;  %v472_v16 = vmul.f32 %v465_v11, %v458_v9 }
 0x1c9   :  { %v456_v15 = vpop.f32.mrf.mxu0 }
 0x1ca   :  { %v473_v17 = vmul.f32 %v469_v12, %v459_v14 }
 0x1cc   :  { %v474_v18 = vadd.f32 %v473_v17, %v472_v16 }
 0x1ce   :  { %475 = vadd.xlane.f32.xlu0 %v474_v18 }
 0x257   :  { %v476_v20 = vpop.xlane.xlu0 %475 }
 0x258   :  { %v484_v21 = vadd.f32 %v531_v19, %v476_v20 }
 0x25a   :  { %486 = vst.msk [vmem:[%s751_s9] sm:$0xff] %vm485_vm3, %v484_v21 }
 0x25b   :  { %491 = vsyncpa [#allocation4], 1 }
 0x25c   :  { %492 = vsyncpa [#allocation6], 1 }

</bundles_post_ra>
